<compile_context>
chip_gen: v7x
topology: tpu7x:2x2x1
jax: 0.10.0
libtpu: 0.0.40
codegen_flags: <defaults>
</compile_context>

<pallas_src>
import jax
import jax.numpy as jnp
from jax.experimental import pallas as pl
from jax.experimental.pallas import tpu as pltpu


def _pos_add_kernel(x_ref, pos_ref, o_ref):
    # x_ref: (TB, TC) rows of the flattened input, pos_ref: (1, TC) shared
    # positional-embedding slab. Broadcast add on the VPU; jnp's in-kernel
    # promotion reproduces PyTorch's `x + pos_embed` dtype semantics.
    o_ref[...] = (x_ref[...] + pos_ref[...]).astype(o_ref.dtype)


def _vmem_budget_bytes():
    """Return (per-step tile working-set budget, vmem_limit_bytes)."""
    try:
        phys = pltpu.get_tpu_info().vmem_capacity_bytes
    except Exception:
        phys = 64 << 20                     # conservative fallback (v7x-sized)
    scoped = min(phys // 2, 32 << 20)       # 32 MiB target on v5e/v6e/v7x
    return (scoped * 3) // 4, scoped        # ~24 MiB working set, 8 MiB headroom


def _pick_tiles(B, F, x_isz, p_isz, o_isz, budget_bytes):
    """Pick (row tile TB, column tile TC) for the flattened (B, F) view.

    Per-step VMEM working set (everything double-buffered):
        x: 2*TB*TC*x_isz  +  out: 2*TB*TC*o_isz  +  pos: 2*TC*p_isz
    Block shapes stay legal: TC is the full row F or a multiple of 128;
    TB is the full batch B or a multiple of the dtype's sublane packing.
    """
    sub = max(8, 32 // min(x_isz, o_isz))     # 8 (f32), 16 (bf16), 32 (int8/fp8)
    per_row_lane = 2 * (x_isz + o_isz)        # bytes per (row, lane): x+out dbl-buf
    per_lane_pos = 2 * p_isz                  # bytes per lane for the pos slab

    def wset(tb, tc):
        return tb * tc * per_row_lane + tc * per_lane_pos

    # TC: the full row when it fits with a minimal row tile, otherwise the
    # widest lane-dense multiple of 128 that does. Cap it so leftover budget
    # is spent on TB (larger TB amortizes the shared pos slab ~1/TB).
    min_rows = min(B, sub)
    tc_cap = 16 * 1024
    if F <= 256 or (F <= tc_cap and wset(min_rows, F) <= budget_bytes):
        TC = F
    else:
        TC = budget_bytes // (min_rows * per_row_lane + per_lane_pos)
        TC = max(128, (min(TC, tc_cap, F) // 128) * 128)

    # TB: spend the remaining budget on rows.
    rows_cap = max(1, (budget_bytes - per_lane_pos * TC) // (per_row_lane * TC))
    if rows_cap >= B:
        TB = B
    else:
        TB = min(B, max(sub, (rows_cap // sub) * sub))

    # Guard: the max(sub, ...) clamp must not overshoot the budget (VMEM-OOM
    # hazard now that the budget sits near the scoped limit).
    while TC > 128 and wset(TB, TC) > budget_bytes:
        TC = max(128, ((TC // 2) // 128) * 128)

    # Megacore: make sure a big-enough problem yields >= 2 grid steps along a
    # "parallel" axis so v7x's second TensorCore gets work.
    total_bytes = B * F * max(x_isz, o_isz)
    if total_bytes >= (4 << 20) and pl.cdiv(B, TB) * pl.cdiv(F, TC) < 2:
        if B >= 2 * sub:
            TB = max(sub, (((B + 1) // 2) // sub) * sub)
        elif F >= 256:
            TC = max(128, (((F + 1) // 2) // 128) * 128)

    return TB, TC


def vit_positional_encoding(x: jax.Array, pos_embed: jax.Array, *,
                            donate_x: bool = False) -> jax.Array:
    """x: (B, N, D); pos_embed: (1, N, D). Returns x + pos_embed (broadcast)."""
    B, N, D = x.shape
    assert pos_embed.shape == (1, N, D)

    # PyTorch's `x + pos_embed` promotes dtypes; reproduce that for the output.
    out_dtype = jnp.promote_types(x.dtype, pos_embed.dtype)

    F = N * D
    x_isz = jnp.dtype(x.dtype).itemsize
    p_isz = jnp.dtype(pos_embed.dtype).itemsize
    o_isz = jnp.dtype(out_dtype).itemsize

    budget_bytes, vmem_limit = _vmem_budget_bytes()
    TB, TC = _pick_tiles(B, F, x_isz, p_isz, o_isz, budget_bytes)

    # Lane-dense 2-D views: the output's last block dim is a multiple of 128
    # whenever N*D allows it (unmasked `vst` instead of masked partial stores).
    x2 = x.reshape(B, F)
    p2 = pos_embed.reshape(1, F)

    # Column axis outer / row axis inner: the pos slab's block index only
    # changes on the outer axis, so it stays VMEM-resident across the inner
    # row loop (fetched once per column block).
    grid = (pl.cdiv(F, TC), pl.cdiv(B, TB))

    aliases = {0: 0} if (donate_x and x.dtype == out_dtype) else {}

    out2 = pl.pallas_call(
        _pos_add_kernel,
        out_shape=jax.ShapeDtypeStruct((B, F), out_dtype),
        grid_spec=pl.GridSpec(
            grid=grid,
            in_specs=[
                pl.BlockSpec((TB, TC), lambda j, i: (i, j)),   # x rows
                pl.BlockSpec((1, TC), lambda j, i: (0, j)),    # shared pos slab
            ],
            out_specs=pl.BlockSpec((TB, TC), lambda j, i: (i, j)),
        ),
        compiler_params=pltpu.CompilerParams(
            dimension_semantics=("parallel", "parallel"),
            vmem_limit_bytes=vmem_limit,
        ),
        input_output_aliases=aliases,
    )(x2, p2)

    return out2.reshape(B, N, D)


if __name__ == "__main__":
    # Small shapes consistent with the module: batch=2, num_patches=8, dim=32.
    B, N, D = 2, 8, 32
    key = jax.random.PRNGKey(0)
    kx, kp = jax.random.split(key)

    x = jax.random.normal(kx, (B, N, D), dtype=jnp.float32)
    # PyTorch inits pos_embed to zeros; use small random values so the add is
    # actually exercised/verifiable.
    pos_embed = 0.02 * jax.random.normal(kp, (1, N, D), dtype=jnp.float32)

    out = vit_positional_encoding(x, pos_embed)
    out = jax.block_until_ready(out)

    # Correctness check against plain-JAX reference (broadcast add).
    ref = x + pos_embed
    assert out.shape == (B, N, D) and out.dtype == ref.dtype
    assert jnp.allclose(out, ref, atol=1e-6, rtol=1e-6)

    # Mixed-dtype check: PyTorch-style promotion (bf16 x + f32 pos -> f32 out).
    xb = x.astype(jnp.bfloat16)
    out_b = jax.block_until_ready(vit_positional_encoding(xb, pos_embed))
    ref_b = xb + pos_embed
    assert out_b.dtype == ref_b.dtype
    assert jnp.allclose(out_b, ref_b, atol=1e-6, rtol=1e-6)

    print("KERNEL_OK")
</pallas_src>

<mosaic_0001>
module attributes {stable_mosaic.version = 11 : i64} {
  func.func @_pos_add_kernel(%arg0: i32, %arg1: i32, %arg2: memref<2x256xf32, #tpu.memory_space<vmem>>, %arg3: memref<1x256xf32, #tpu.memory_space<vmem>>, %arg4: memref<2x256xf32, #tpu.memory_space<vmem>>) attributes {dimension_semantics = [#tpu.dimension_semantics<parallel>, #tpu.dimension_semantics<parallel>], iteration_bounds = array<i64: 1, 1>, scalar_prefetch = 0 : i64, scratch_operands = 0 : i64, tpu.core_type = #tpu.core_type<tc>, window_params = [{transform_indices = @transform_0, window_bounds = array<i64: 2, 256>}, {transform_indices = @transform_1, window_bounds = array<i64: 1, 256>}, {transform_indices = @transform_2, window_bounds = array<i64: 2, 256>}]} {
    %c0 = arith.constant 0 : index
    %c0_0 = arith.constant 0 : index
    %0 = vector.load %arg2[%c0, %c0_0] : memref<2x256xf32, #tpu.memory_space<vmem>>, vector<2x256xf32>
    %c0_1 = arith.constant 0 : index
    %c0_2 = arith.constant 0 : index
    %1 = vector.load %arg3[%c0_1, %c0_2] : memref<1x256xf32, #tpu.memory_space<vmem>>, vector<1x256xf32>
    %2 = vector.broadcast %1 : vector<1x256xf32> to vector<2x256xf32>
    %3 = arith.addf %0, %2 : vector<2x256xf32>
    %c0_3 = arith.constant 0 : index
    %c0_4 = arith.constant 0 : index
    %4 = vector.load %arg4[%c0_3, %c0_4] : memref<2x256xf32, #tpu.memory_space<vmem>>, vector<2x256xf32>
    tpu.vector_store %arg4[%c0_3, %c0_4], %3 {strides = array<i32>} : memref<2x256xf32, #tpu.memory_space<vmem>>, vector<2x256xf32>,
    return
  }
  func.func @transform_0(%arg0: i32, %arg1: i32) -> (i32, i32) {
    %c0_i32 = arith.constant 0 : i32
    return %arg1, %arg0 : i32, i32
  }
  func.func @transform_1(%arg0: i32, %arg1: i32) -> (i32, i32) {
    %c0_i32 = arith.constant 0 : i32
    %c0_i32_0 = arith.constant 0 : i32
    return %c0_i32, %arg0 : i32, i32
  }
  func.func @transform_2(%arg0: i32, %arg1: i32) -> (i32, i32) {
    %c0_i32 = arith.constant 0 : i32
    return %arg1, %arg0 : i32, i32
  }
}

</mosaic_0001>

<bundles_post_ra>
// kernel: tpu_custom_call.1
= control target key start
LH: loop header
LB: loop body
LE: loop exit
PB: predicated region body
PF: predicated region fallthrough
CT: control target
= control target key end

     0   :  { %7 = vsyncpa [#allocation3], 0  ;;  %s157_s0 = inlined_call_operand.hbm [shape: f32[2,256], index: 0, kind: input, shape index: {}]   ;;  %s158_s1 = inlined_call_operand.vmem [shape: f32[1,256], index: 1, kind: input, shape index: {}]   ;;  %s159_s2 = inlined_call_operand.hbm [shape: f32[2,256], index: 2, kind: output, shape index: {}]  }
   0x1   :  { %8 = vsyncpa [#allocation4], 0  ;;  %s112_s9 = smov [#allocation2]   ;;  %s64_s13 = scalar_lea.hbm %s157_s0, 64 }
   0x2   :  { %s15_s10 = sshll.u32 %s112_s9, 4  ;;  %p65_p0 = scmp.ne.s32.totalorder %s157_s0, %s64_s13  ;;  %s16_s10 = int_to_ptr.vmem [resolvable:$true] %s15_s10 }
   0x3   :  { %p68_p1 = scmp.lt.u32.totalorder %s64_s13, %s157_s0 }
   0x5   :  { %p70_p2 = pnand %p68_p1, %p65_p0 }
   0x7   :  { %73 = shalt.err (!%p70_p2)
}
   0x8   :  { %s74_s18 = scalar_lea.vmem %s16_s10, 64  ;;  %p79_p4 = scmp.lt.s32.totalorder %s16_s10, %s16_s10 }
   0x9   :  { %p75_p3 = scmp.ne.s32.totalorder %s16_s10, %s74_s18  ;;  %p80_p5 = scmp.lt.s32.totalorder %s74_s18, %s74_s18 }
   0xb   :  { %p81_p6 = por %p80_p5, %p79_p4 }
   0xd   :  { %p82_p7 = pnand %p81_p6, %p75_p3 }
   0xf   :  { %85 = shalt.err (!%p82_p7)
}
  0x10   :  { %18 = dma.hbm_to_vmem [thread:$0]  %s157_s0, 64, %s16_s10, [#allocation3]  }
  0x11   :  { %108 = dma.done.wait [#allocation3], 64  }
  0x12   :  { %109 = vsyncadd [#allocation3], 4294967232  ;;  %v27_v0 = vlaneseq  ;;  %v113_v1 = vmov 1983009808   ;;  %v25_v7 = vld [vmem:[%s158_s1] sm:$0x3] }
  0x13   :  { %v37_v2 = vunpack.c.l.s4 %v113_v1  ;;  %v24_v12 = vld [vmem:[#allocation2] sm:$0xf]  ;;  %s114_s23 = smov [#allocation5]  }
  0x14   :  { %v28_v3 = vshrl.u32 %v27_v0, 7  ;;  %s52_s0 = sshll.u32 %s114_s23, 4  ;;  %s53_s0 = int_to_ptr.vmem [resolvable:$true] %s52_s0 }
  0x15   :  { %v38_v6 = vunpack.c.0.s8 %v37_v2  ;;  %s86_s24 = scalar_lea.vmem %s53_s0, 64  ;;  %p91_p9 = scmp.lt.s32.totalorder %s53_s0, %s53_s0 }
  0x16   :  { %v29_v4 = vsub.s32 0, %v28_v3  ;;  %v33_v5 = vsub.s32 1, %v28_v3  ;;  %p87_p8 = scmp.ne.s32.totalorder %s53_s0, %s86_s24  ;;  %p92_p10 = scmp.lt.s32.totalorder %s86_s24, %s86_s24 }
  0x17   :  { %v41_v10 = vsub.s32 %v38_v6, %v28_v3 }
  0x18   :  { %v30_v8 = vrot.slane %v25_v7, %v29_v4  ;;  %v34_v9 = vrot.slane %v25_v7, %v33_v5  ;;  %p93_p11 = por %p92_p10, %p91_p9 }
  0x1a   :  { %v35_v11 = vcombine.low %v30_v8, %v34_v9  ;;  %p94_p12 = pnand %p93_p11, %p87_p8 }
  0x1c   :  { %v42_v13 = vrot.slane %v35_v11, %v41_v10 }
  0x1e   :  { %v44_v14 = vadd.f32 %v42_v13, %v24_v12 }
  0x20   :  { %45 = vst [vmem:[#allocation5] sm:$0xf] %v44_v14 }
  0x21   :  { %97 = shalt.err (!%p94_p12)
}
  0x22   :  { %s98_s26 = scalar_lea.hbm %s159_s2, 64 }
  0x23   :  { %p99_p13 = scmp.ne.s32.totalorder %s159_s2, %s98_s26  ;;  %p102_p0 = scmp.lt.u32.totalorder %s98_s26, %s159_s2 }
  0x25   :  { %p104_p1 = pnand %p102_p0, %p99_p13 }
  0x27   :  { %107 = shalt.err (!%p104_p1)
}
  0x28   :  { %55 = dma.vmem_to_hbm [thread:$0]  %s53_s0, 64, %s159_s2, [#allocation4]  }
  0x29   :  { %110 = dma.done.wait [#allocation4], 64  }
  0x2a   :  { %111 = vsyncadd [#allocation4], 4294967232 }
  0x2b   :  { %59 = vsyncpa [#allocation3], 1 }
  0x2c   :  { %60 = vsyncpa [#allocation4], 1 }

</bundles_post_ra>
